<compile_context>
chip_gen: v7x
topology: tpu7x:2x2x1
jax: 0.10.0
libtpu: 0.0.40
codegen_flags: <defaults>
</compile_context>

<pallas_src>
import jax
import jax.numpy as jnp
from jax.experimental import pallas as pl
from jax.experimental.pallas import tpu as pltpu


def _round_up(x, m):
    return ((x + m - 1) // m) * m


def _lstmlm_kernel(x_ref, w1_ref, b1_ref, w2_ref, b2_ref, o_ref, h_ref):
    # Grid: (i over M tiles, j over vocab tiles); j is the inner (fast) axis.
    # Layer 1 is recomputed only when a new M tile starts (j == 0) and cached
    # in VMEM scratch; every vocab tile reuses it.
    @pl.when(pl.program_id(1) == 0)
    def _():
        x = jnp.tanh(x_ref[...].astype(jnp.float32))               # tanh #1
        h = jnp.dot(x.astype(w1_ref.dtype), w1_ref[...],
                    preferred_element_type=jnp.float32)             # inner_lin
        h_ref[...] = jnp.tanh(h + b1_ref[...])                      # tanh #2

    o = jnp.dot(h_ref[...].astype(w2_ref.dtype), w2_ref[...],
                preferred_element_type=jnp.float32)                 # linear_two
    o_ref[...] = (o + b2_ref[...]).astype(o_ref.dtype)


def lstmlm_forward(batch, h, params, *, n, embedding_dim,
                   matmul_dtype=jnp.float32, tile_n=1024):
    """batch: int32 token ids (T,) with T = n*B. Returns (h, logits (B, V))."""
    emb = params["embedding"]          # (V, E)
    w1 = params["inner_lin_w"]         # (nE, nE) stored pre-transposed (in, out)
    b1 = params["inner_lin_b"]         # (nE,)
    w2 = params["linear_two_w"]        # (nE, V)  stored pre-transposed (in, out)
    b2 = params["linear_two_b"]        # (V,)

    vocab_size = emb.shape[0]
    nE = n * embedding_dim
    T = batch.shape[0]
    B = T // n

    # --- glue: embedding gather + the exact .t().contiguous().view reorder ---
    # TODO(synk): for large T, fold the gather into the kernel via scalar
    # prefetch of the token ids + pl.Element row gather; not worth it here.
    wv = emb[batch]                                    # (T, E)
    x = wv.T.reshape(B, nE)                            # (B, nE)

    # --- tiling: pad M to >= 8 sublanes, pick a lane-dense vocab tile -------
    TM = min(128, _round_up(B, 8))
    B_pad = _round_up(B, TM)
    TN = min(tile_n, _round_up(vocab_size, 128))       # multiple of 128
    V_pad = _round_up(vocab_size, TN)

    x = x.astype(matmul_dtype)
    if B_pad != B:
        x = jnp.pad(x, ((0, B_pad - B), (0, 0)))

    w1_k = w1.astype(matmul_dtype)
    w2_k = w2.astype(matmul_dtype)
    if V_pad != vocab_size:
        w2_k = jnp.pad(w2_k, ((0, 0), (0, V_pad - vocab_size)))
    b1_r = b1.reshape(1, nE).astype(jnp.float32)
    b2_r = b2.reshape(1, vocab_size).astype(jnp.float32)
    if V_pad != vocab_size:
        b2_r = jnp.pad(b2_r, ((0, 0), (0, V_pad - vocab_size)))

    grid = (B_pad // TM, V_pad // TN)
    itemsize = jnp.dtype(matmul_dtype).itemsize
    cost = pl.CostEstimate(
        flops=2 * B_pad * nE * nE + 2 * B_pad * nE * V_pad,
        transcendentals=2 * B_pad * nE,
        bytes_accessed=(B_pad * nE + nE * nE + grid[0] * nE * V_pad) * itemsize
                       + (nE + V_pad) * 4 + B_pad * V_pad * 4,
    )

    out = pl.pallas_call(
        _lstmlm_kernel,
        out_shape=jax.ShapeDtypeStruct((B_pad, V_pad), jnp.float32),
        grid_spec=pltpu.PrefetchScalarGridSpec(
            num_scalar_prefetch=0,
            grid=grid,
            in_specs=[
                pl.BlockSpec((TM, nE), lambda i, j: (i, 0)),    # x (M tile)
                pl.BlockSpec((nE, nE), lambda i, j: (0, 0)),    # w1 (resident)
                pl.BlockSpec((1, nE), lambda i, j: (0, 0)),     # b1
                pl.BlockSpec((nE, TN), lambda i, j: (0, j)),    # w2 vocab tile
                pl.BlockSpec((1, TN), lambda i, j: (0, j)),     # b2 vocab tile
            ],
            out_specs=pl.BlockSpec((TM, TN), lambda i, j: (i, j)),
            scratch_shapes=[pltpu.VMEM((TM, nE), jnp.float32)],  # cached layer-1
        ),
        compiler_params=pltpu.CompilerParams(
            # M tiles independent -> parallel (megacore / v7x 2 TCs);
            # vocab axis "arbitrary": layer-1 hoist requires j==0 first.
            dimension_semantics=("parallel", "arbitrary"),
        ),
        cost_estimate=cost,
    )(x, w1_k, b1_r, w2_k, b2_r)

    # forward returns (h, out.squeeze()); strip padding back to (B, V).
    return h, out[:B, :vocab_size]


def make_params(key, vocab_size, embedding_dim, n):
    """Weights are stored pre-transposed to (in, out) so no per-call .T."""
    nE = n * embedding_dim
    k_emb, k_w1, k_b1, k_w2 = jax.random.split(key, 4)
    # nn.Embedding default: N(0, 1)
    embedding = jax.random.normal(k_emb, (vocab_size, embedding_dim), jnp.float32)
    # inner_lin: default nn.Linear init U(-1/sqrt(in), 1/sqrt(in))
    bound = 1.0 / jnp.sqrt(jnp.float32(nE))
    inner_lin_w = jax.random.uniform(k_w1, (nE, nE), jnp.float32, -bound, bound)
    inner_lin_b = jax.random.uniform(k_b1, (nE,), jnp.float32, -bound, bound)
    # linear_two: init_weights() -> weight U(-0.1, 0.1), bias = 0
    linear_two_w = jax.random.uniform(k_w2, (nE, vocab_size), jnp.float32, -0.1, 0.1)
    linear_two_b = jnp.zeros((vocab_size,), jnp.float32)
    return dict(
        embedding=embedding,
        inner_lin_w=inner_lin_w,      # (in, out)
        inner_lin_b=inner_lin_b,
        linear_two_w=linear_two_w,    # (in, out)
        linear_two_b=linear_two_b,
    )


def reference_forward(batch, params, *, n, embedding_dim):
    """Pure-JAX reference of the same (eval-style) forward."""
    wv = params["embedding"][batch]
    nE = n * embedding_dim
    x = wv.T.reshape(-1, nE)
    h = jnp.tanh(x)
    h = jnp.tanh(h @ params["inner_lin_w"] + params["inner_lin_b"])
    return h @ params["linear_two_w"] + params["linear_two_b"]


if __name__ == "__main__":
    vocab_size = 128
    embedding_dim = 32
    n = 4
    B = 2
    T = n * B

    key = jax.random.PRNGKey(0)
    k_params, k_batch = jax.random.split(key)
    params = make_params(k_params, vocab_size, embedding_dim, n)
    batch = jax.random.randint(k_batch, (T,), 0, vocab_size, dtype=jnp.int32)
    h0 = jnp.zeros((1, B, 60), jnp.float32)  # pass-through hidden state

    ref = reference_forward(batch, params, n=n, embedding_dim=embedding_dim)

    # f32 path (exact against reference)
    h_out, logits = lstmlm_forward(batch, h0, params, n=n,
                                   embedding_dim=embedding_dim,
                                   matmul_dtype=jnp.float32)
    logits = jax.block_until_ready(logits)
    assert logits.shape == (B, vocab_size)
    assert jnp.allclose(logits, ref, atol=1e-4, rtol=1e-4)

    # bf16 matmul-operand path (v6e/v7x MXU / halved w2 HBM stream)
    _, logits_bf16 = lstmlm_forward(batch, h0, params, n=n,
                                    embedding_dim=embedding_dim,
                                    matmul_dtype=jnp.bfloat16)
    logits_bf16 = jax.block_until_ready(logits_bf16)
    assert logits_bf16.shape == (B, vocab_size)
    assert bool(jnp.all(jnp.isfinite(logits_bf16)))
    assert jnp.allclose(logits_bf16, ref, atol=5e-2)

    print("KERNEL_OK")
</pallas_src>

<mosaic_0001>
module attributes {stable_mosaic.version = 11 : i64} {
  func.func @_lstmlm_kernel(%arg0: i32, %arg1: i32, %arg2: memref<8x128xf32, #tpu.memory_space<vmem>>, %arg3: memref<128x128xf32, #tpu.memory_space<vmem>>, %arg4: memref<1x128xf32, #tpu.memory_space<vmem>>, %arg5: memref<128x128xf32, #tpu.memory_space<vmem>>, %arg6: memref<1x128xf32, #tpu.memory_space<vmem>>, %arg7: memref<8x128xf32, #tpu.memory_space<vmem>>, %arg8: memref<8x128xf32, #tpu.memory_space<vmem>>) attributes {dimension_semantics = [#tpu.dimension_semantics<parallel>, #tpu.dimension_semantics<arbitrary>], iteration_bounds = array<i64: 1, 1>, scalar_prefetch = 0 : i64, scratch_operands = 1 : i64, tpu.core_type = #tpu.core_type<tc>, window_params = [{transform_indices = @transform_0, window_bounds = array<i64: 8, 128>}, {pipeline_mode = #tpu.pipeline_mode<synchronous>, transform_indices = @transform_1, window_bounds = array<i64: 128, 128>}, {pipeline_mode = #tpu.pipeline_mode<synchronous>, transform_indices = @transform_2, window_bounds = array<i64: 1, 128>}, {transform_indices = @transform_3, window_bounds = array<i64: 128, 128>}, {transform_indices = @transform_4, window_bounds = array<i64: 1, 128>}, {transform_indices = @transform_5, window_bounds = array<i64: 8, 128>}]} {
    %c0_i32 = arith.constant 0 : i32
    %0 = arith.cmpi eq, %arg1, %c0_i32 : i32
    %1 = arith.extui %0 : i1 to i32
    %c0_i32_0 = arith.constant 0 : i32
    %2 = arith.cmpi ne, %1, %c0_i32_0 : i32
    scf.if %2 {
      %c0_8 = arith.constant 0 : index
      %c0_9 = arith.constant 0 : index
      %10 = vector.load %arg2[%c0_8, %c0_9] : memref<8x128xf32, #tpu.memory_space<vmem>>, vector<8x128xf32>
      %11 = math.tanh %10 : vector<8x128xf32>
      %c0_10 = arith.constant 0 : index
      %c0_11 = arith.constant 0 : index
      %12 = vector.load %arg3[%c0_10, %c0_11] : memref<128x128xf32, #tpu.memory_space<vmem>>, vector<128x128xf32>
      %cst_12 = arith.constant dense<0.000000e+00> : vector<8x128xf32>
      %13 = tpu.matmul %11, %12, %cst_12 {dimension_numbers = #tpu.dot_dimension_numbers<[1], [0], [0], [1], [0, 0, 1, 1], [], []>} : vector<8x128xf32>, vector<128x128xf32>, vector<8x128xf32> -> vector<8x128xf32>
      %c0_13 = arith.constant 0 : index
      %c0_14 = arith.constant 0 : index
      %14 = vector.load %arg4[%c0_13, %c0_14] : memref<1x128xf32, #tpu.memory_space<vmem>>, vector<1x128xf32>
      %15 = vector.broadcast %14 : vector<1x128xf32> to vector<8x128xf32>
      %16 = arith.addf %13, %15 : vector<8x128xf32>
      %17 = math.tanh %16 : vector<8x128xf32>
      %c0_15 = arith.constant 0 : index
      %c0_16 = arith.constant 0 : index
      %18 = vector.load %arg8[%c0_15, %c0_16] : memref<8x128xf32, #tpu.memory_space<vmem>>, vector<8x128xf32>
      tpu.vector_store %arg8[%c0_15, %c0_16], %17 {strides = array<i32>} : memref<8x128xf32, #tpu.memory_space<vmem>>, vector<8x128xf32>,
    } else {
    }
    %c0 = arith.constant 0 : index
    %c0_1 = arith.constant 0 : index
    %3 = vector.load %arg8[%c0, %c0_1] : memref<8x128xf32, #tpu.memory_space<vmem>>, vector<8x128xf32>
    %c0_2 = arith.constant 0 : index
    %c0_3 = arith.constant 0 : index
    %4 = vector.load %arg5[%c0_2, %c0_3] : memref<128x128xf32, #tpu.memory_space<vmem>>, vector<128x128xf32>
    %cst = arith.constant dense<0.000000e+00> : vector<8x128xf32>
    %5 = tpu.matmul %3, %4, %cst {dimension_numbers = #tpu.dot_dimension_numbers<[1], [0], [0], [1], [0, 0, 1, 1], [], []>} : vector<8x128xf32>, vector<128x128xf32>, vector<8x128xf32> -> vector<8x128xf32>
    %c0_4 = arith.constant 0 : index
    %c0_5 = arith.constant 0 : index
    %6 = vector.load %arg6[%c0_4, %c0_5] : memref<1x128xf32, #tpu.memory_space<vmem>>, vector<1x128xf32>
    %7 = vector.broadcast %6 : vector<1x128xf32> to vector<8x128xf32>
    %8 = arith.addf %5, %7 : vector<8x128xf32>
    %c0_6 = arith.constant 0 : index
    %c0_7 = arith.constant 0 : index
    %9 = vector.load %arg7[%c0_6, %c0_7] : memref<8x128xf32, #tpu.memory_space<vmem>>, vector<8x128xf32>
    tpu.vector_store %arg7[%c0_6, %c0_7], %8 {strides = array<i32>} : memref<8x128xf32, #tpu.memory_space<vmem>>, vector<8x128xf32>,
    return
  }
  func.func @transform_0(%arg0: i32, %arg1: i32) -> (i32, i32) {
    %c0_i32 = arith.constant 0 : i32
    %c0_i32_0 = arith.constant 0 : i32
    return %arg0, %c0_i32 : i32, i32
  }
  func.func @transform_1(%arg0: i32, %arg1: i32) -> (i32, i32) {
    %c0_i32 = arith.constant 0 : i32
    %c0_i32_0 = arith.constant 0 : i32
    %c0_i32_1 = arith.constant 0 : i32
    return %c0_i32, %c0_i32_0 : i32, i32
  }
  func.func @transform_2(%arg0: i32, %arg1: i32) -> (i32, i32) {
    %c0_i32 = arith.constant 0 : i32
    %c0_i32_0 = arith.constant 0 : i32
    %c0_i32_1 = arith.constant 0 : i32
    return %c0_i32, %c0_i32_0 : i32, i32
  }
  func.func @transform_3(%arg0: i32, %arg1: i32) -> (i32, i32) {
    %c0_i32 = arith.constant 0 : i32
    %c0_i32_0 = arith.constant 0 : i32
    return %c0_i32, %arg1 : i32, i32
  }
  func.func @transform_4(%arg0: i32, %arg1: i32) -> (i32, i32) {
    %c0_i32 = arith.constant 0 : i32
    %c0_i32_0 = arith.constant 0 : i32
    return %c0_i32, %arg1 : i32, i32
  }
  func.func @transform_5(%arg0: i32, %arg1: i32) -> (i32, i32) {
    %c0_i32 = arith.constant 0 : i32
    return %arg0, %arg1 : i32, i32
  }
}

</mosaic_0001>

<bundles_post_ra>
// kernel: tpu_custom_call.1
= control target key start
LH: loop header
LB: loop body
LE: loop exit
PB: predicated region body
PF: predicated region fallthrough
CT: control target
= control target key end

     0   :  { %10 = vsyncpa [#allocation4], 0  ;;  %s648_s0 = inlined_call_operand.hbm [shape: f32[8,128], index: 0, kind: input, shape index: {}]   ;;  %s649_s1 = inlined_call_operand.hbm [shape: f32[128,128], index: 1, kind: input, shape index: {}]   ;;  %s650_s2 = inlined_call_operand.vmem [shape: f32[1,128], index: 2, kind: input, shape index: {}]   ;;  %s651_s3 = inlined_call_operand.hbm [shape: f32[128,128], index: 3, kind: input, shape index: {}]   ;;  %s652_s4 = inlined_call_operand.vmem [shape: f32[1,128], index: 4, kind: input, shape index: {}]   ;;  %s653_s5 = inlined_call_operand.hbm [shape: f32[8,128], index: 5, kind: output, shape index: {}]  }
   0x1   :  { %11 = vsyncpa [#allocation7], 0 }
   0x2   :  { %12 = vsyncpa [#allocation5], 0  ;;  %s533_s18 = smov [#allocation6]   ;;  %s439_s22 = scalar_lea.hbm %s649_s1, 2048 }
   0x3   :  { %s28_s19 = sshll.u32 %s533_s18, 4  ;;  %p440_p0 = scmp.ne.s32.totalorder %s649_s1, %s439_s22  ;;  %s29_s19 = int_to_ptr.vmem [resolvable:$true] %s28_s19 }
   0x4   :  { %p443_p1 = scmp.lt.u32.totalorder %s439_s22, %s649_s1 }
   0x6   :  { %p445_p2 = pnand %p443_p1, %p440_p0 }
   0x8   :  { %448 = shalt.err (!%p445_p2)
}
   0x9   :  { %s449_s27 = scalar_lea.vmem %s29_s19, 2048  ;;  %p454_p4 = scmp.lt.s32.totalorder %s29_s19, %s29_s19 }
   0xa   :  { %p450_p3 = scmp.ne.s32.totalorder %s29_s19, %s449_s27  ;;  %p455_p5 = scmp.lt.s32.totalorder %s449_s27, %s449_s27 }
   0xc   :  { %p456_p6 = por %p455_p5, %p454_p4 }
   0xe   :  { %p457_p7 = pnand %p456_p6, %p450_p3 }
  0x10   :  { %460 = shalt.err (!%p457_p7)
}
  0x11   :  { %s534_s28 = smov 128   ;;  %s535_s29 = smov 8  }
  0x12   :  { %34 = dma.hbm_to_vmem [thread:$0]  %s649_s1, 2048, %s29_s19, [#allocation7], %s534_s28, %s534_s28, %s535_s29  }
  0x13   :  { %s536_s7 = smov [#allocation3]   ;;  %s537_s9 = smov [#allocation8]  }
  0x14   :  { %s19_s8 = sshll.u32 %s536_s7, 4  ;;  %s42_s10 = sshll.u32 %s537_s9, 4  ;;  %s20_s8 = int_to_ptr.vmem [resolvable:$true] %s19_s8  ;;  %s43_s10 = int_to_ptr.vmem [resolvable:$true] %s42_s10 }
  0x15   :  { %s461_s13 = scalar_lea.hbm %s648_s0, 128 }
  0x16   :  { %p462_p8 = scmp.ne.s32.totalorder %s648_s0, %s461_s13  ;;  %p465_p9 = scmp.lt.u32.totalorder %s461_s13, %s648_s0 }
  0x18   :  { %p467_p10 = pnand %p465_p9, %p462_p8 }
  0x1a   :  { %470 = shalt.err (!%p467_p10)
}
  0x1b   :  { %s471_s1 = scalar_lea.vmem %s20_s8, 128  ;;  %p476_p12 = scmp.lt.s32.totalorder %s20_s8, %s20_s8 }
  0x1c   :  { %p472_p11 = scmp.ne.s32.totalorder %s20_s8, %s471_s1  ;;  %p477_p13 = scmp.lt.s32.totalorder %s471_s1, %s471_s1 }
  0x1e   :  { %p478_p0 = por %p477_p13, %p476_p12 }
  0x20   :  { %p479_p1 = pnand %p478_p0, %p472_p11 }
  0x22   :  { %482 = shalt.err (!%p479_p1)
}
  0x23   :  { %22 = dma.hbm_to_vmem [thread:$0]  %s648_s0, 128, %s20_s8, [#allocation4]  }
  0x24   :  { %s483_s22 = scalar_lea.hbm %s651_s3, 2048 }
  0x25   :  { %p484_p2 = scmp.ne.s32.totalorder %s651_s3, %s483_s22  ;;  %p487_p3 = scmp.lt.u32.totalorder %s483_s22, %s651_s3 }
  0x27   :  { %p489_p4 = pnand %p487_p3, %p484_p2 }
  0x29   :  { %492 = shalt.err (!%p489_p4)
}
  0x2a   :  { %s493_s27 = scalar_lea.vmem %s43_s10, 2048  ;;  %p498_p6 = scmp.lt.s32.totalorder %s43_s10, %s43_s10 }
  0x2b   :  { %p494_p5 = scmp.ne.s32.totalorder %s43_s10, %s493_s27  ;;  %p499_p7 = scmp.lt.s32.totalorder %s493_s27, %s493_s27 }
  0x2d   :  { %p500_p8 = por %p499_p7, %p498_p6 }
  0x2f   :  { %p501_p9 = pnand %p500_p8, %p494_p5 }
  0x31   :  { %504 = shalt.err (!%p501_p9)
}
  0x32   :  { %48 = dma.hbm_to_vmem [thread:$0]  %s651_s3, 2048, %s43_s10, [#allocation7], %s534_s28, %s534_s28, %s535_s29  }
  0x33   :  { %527 = dma.done.wait [#allocation4], 128  }
  0x34   :  { %528 = vsyncadd [#allocation4], 4294967168 }
  0x35   :  { %529 = dma.done.wait [#allocation7], 4096  }
  0x36   :  { %530 = vsyncadd [#allocation7], 4294963200  ;;  %v538_v0 = vmov 0.0|0.0   ;;  %vm539_vm0 = vmmov 0   ;;  %v540_v1 = vmov 0.0   ;;  %v66_v2 = vld [vmem:[#allocation6] sm:$0xff] }
  0x37   :  { %378 = vmatprep.subr.bf16.mxu0 %v538_v0  ;;  %340 = vmatprep.mubr.msk.f32.mxu0 %vm539_vm0, %v540_v1  ;;  %v67_v3 = vld [vmem:[#allocation6 + $0x8] sm:$0xff]  ;;  %v68_v4 = vld [vmem:[#allocation6 + $0x10] sm:$0xff]  ;;  %v69_v6 = vld [vmem:[#allocation6 + $0x18] sm:$0xff]  ;;  %s541_s7 = smov [#allocation9]  }
  0x38   :  { %402 = vmatprep.subr.bf16.mxu1 %v538_v0  ;;  %375 = vmatprep.mubr.msk.f32.mxu1 %vm539_vm0, %v540_v1  ;;  %v379_v5 = vpack.c.bf16 %v67_v3, %v66_v2  ;;  %v382_v7 = vpack.c.bf16 %v69_v6, %v68_v4  ;;  %v70_v8 = vld [vmem:[#allocation6 + $0x20] sm:$0xff]  ;;  %v71_v9 = vld [vmem:[#allocation6 + $0x28] sm:$0xff]  ;;  %v164_v12 = vld [vmem:[#allocation8 + $0x10] sm:$0xff]  ;;  %s262_s8 = sshll.u32 %s541_s7, 4  ;;  %s263_s8 = int_to_ptr.vmem [resolvable:$true] %s262_s8 }
  0x39   :  { %v162_v10 = vld [vmem:[#allocation8] sm:$0xff]  ;;  %v163_v11 = vld [vmem:[#allocation8 + $0x8] sm:$0xff]  ;;  %v165_v13 = vld [vmem:[#allocation8 + $0x18] sm:$0xff]  ;;  %v385_v14 = vpack.c.bf16 %v71_v9, %v70_v8  ;;  %s505_s9 = scalar_lea.vmem %s263_s8, 128  ;;  %p510_p11 = scmp.lt.s32.totalorder %s263_s8, %s263_s8 }
  0x3a   :  { %380 = vmatpush3.bf16.msra.mxu0 %v379_v5  ;;  %v403_v15 = vpack.c.bf16 %v163_v11, %v162_v10  ;;  %v72_v16 = vld [vmem:[#allocation6 + $0x30] sm:$0xff]  ;;  %v73_v17 = vld [vmem:[#allocation6 + $0x38] sm:$0xff]  ;;  %v406_v18 = vpack.c.bf16 %v165_v13, %v164_v12  ;;  %v166_v19 = vld [vmem:[#allocation8 + $0x20] sm:$0xff]  ;;  %p506_p10 = scmp.ne.s32.totalorder %s263_s8, %s505_s9  ;;  %p511_p12 = scmp.lt.s32.totalorder %s505_s9, %s505_s9 }
  0x3b   :  { %381 = vmatprep.subr.bf16.mxu0 %v538_v0  ;;  %v167_v20 = vld [vmem:[#allocation8 + $0x28] sm:$0xff]  ;;  %v388_v21 = vpack.c.bf16 %v73_v17, %v72_v16  ;;  %v74_v22 = vld [vmem:[#allocation6 + $0x40] sm:$0xff]  ;;  %v168_v25 = vld [vmem:[#allocation8 + $0x30] sm:$0xff] }
  0x3c   :  { %404 = vmatpush3.bf16.msra.mxu1 %v403_v15  ;;  %v75_v23 = vld [vmem:[#allocation6 + $0x48] sm:$0xff]  ;;  %v409_v24 = vpack.c.bf16 %v167_v20, %v166_v19  ;;  %v169_v26 = vld [vmem:[#allocation8 + $0x38] sm:$0xff]  ;;  %v76_v28 = vld [vmem:[#allocation6 + $0x50] sm:$0xff]  ;;  %p512_p13 = por %p511_p12, %p510_p11 }
  0x3d   :  { %405 = vmatprep.subr.bf16.mxu1 %v538_v0  ;;  %v391_v27 = vpack.c.bf16 %v75_v23, %v74_v22  ;;  %v77_v29 = vld [vmem:[#allocation6 + $0x58] sm:$0xff]  ;;  %v412_v30 = vpack.c.bf16 %v169_v26, %v168_v25  ;;  %v170_v32 = vld [vmem:[#allocation8 + $0x40] sm:$0xff]  ;;  %v171_v33 = vld [vmem:[#allocation8 + $0x48] sm:$0xff] }
  0x3e   :  { %383 = vmatpush3.bf16.msra.mxu0 %v382_v7  ;;  %v64_v31 = vld [vmem:[#allocation3] sm:$0xff]  ;;  %v394_v34 = vpack.c.bf16 %v77_v29, %v76_v28  ;;  %v78_v35 = vld [vmem:[#allocation6 + $0x60] sm:$0xff]  ;;  %v79_v36 = vld [vmem:[#allocation6 + $0x68] sm:$0xff]  ;;  %v415_v37 = vpack.c.bf16 %v171_v33, %v170_v32  ;;  %p513_p0 = pnand %p512_p13, %p506_p10 }
  0x3f   :  { %384 = vmatprep.subr.bf16.mxu0 %v538_v0  ;;  %435 = vtanh.f32 %v64_v31  ;;  %v397_v38 = vpack.c.bf16 %v79_v36, %v78_v35  ;;  %v80_v39 = vld [vmem:[#allocation6 + $0x70] sm:$0xff]  ;;  %v81_v40 = vld [vmem:[#allocation6 + $0x78] sm:$0xff]  ;;  %v174_v46 = vld [vmem:[#allocation8 + $0x60] sm:$0xff] }
  0x40   :  { %407 = vmatpush3.bf16.msra.mxu1 %v406_v18  ;;  %v400_v41 = vpack.c.bf16 %v81_v40, %v80_v39  ;;  %v172_v43 = vld [vmem:[#allocation8 + $0x50] sm:$0xff]  ;;  %v173_v44 = vld [vmem:[#allocation8 + $0x58] sm:$0xff]  ;;  %v175_v47 = vld [vmem:[#allocation8 + $0x68] sm:$0xff] }
  0x41   :  { %408 = vmatprep.subr.bf16.mxu1 %v538_v0  ;;  %v418_v45 = vpack.c.bf16 %v173_v44, %v172_v43  ;;  %v421_v48 = vpack.c.bf16 %v175_v47, %v174_v46  ;;  %v176_v49 = vld [vmem:[#allocation8 + $0x70] sm:$0xff]  ;;  %v177_v50 = vld [vmem:[#allocation8 + $0x78] sm:$0xff] }
  0x42   :  { %386 = vmatpush3.bf16.msra.mxu0 %v385_v14  ;;  %v424_v51 = vpack.c.bf16 %v177_v50, %v176_v49  ;;  %v272_v52 = vld [vmem:[%s650_s2] ss:$0 sm:$0xff] }
  0x43   :  { %387 = vmatprep.subr.bf16.mxu0 %v538_v0  ;;  %v273_v57 = vld [vmem:[%s652_s4] ss:$0 sm:$0xff] }
  0x44   :  { %410 = vmatpush3.bf16.msra.mxu1 %v409_v24 }
  0x45   :  { %411 = vmatprep.subr.bf16.mxu1 %v538_v0 }
  0x46   :  { %389 = vmatpush3.bf16.msra.mxu0 %v388_v21 }
  0x47   :  { %390 = vmatprep.subr.bf16.mxu0 %v538_v0 }
  0x48   :  { %413 = vmatpush3.bf16.msra.mxu1 %v412_v30 }
  0x49   :  { %414 = vmatprep.subr.bf16.mxu1 %v538_v0  ;;  %v436_v42 = vpop.eup %435 }
  0x4a   :  { %392 = vmatpush3.bf16.msra.mxu0 %v391_v27 }
  0x4b   :  { %393 = vmatprep.subr.bf16.mxu0 %v538_v0 }
  0x4c   :  { %416 = vmatpush3.bf16.msra.mxu1 %v415_v37 }
  0x4d   :  { %417 = vmatprep.subr.bf16.mxu1 %v538_v0 }
  0x4e   :  { %395 = vmatpush3.bf16.msra.mxu0 %v394_v34 }
  0x4f   :  { %396 = vmatprep.subr.bf16.mxu0 %v538_v0 }
  0x50   :  { %419 = vmatpush3.bf16.msra.mxu1 %v418_v45 }
  0x51   :  { %420 = vmatprep.subr.bf16.mxu1 %v538_v0 }
  0x52   :  { %398 = vmatpush3.bf16.msra.mxu0 %v397_v38 }
  0x53   :  { %399 = vmatprep.subr.bf16.mxu0 %v538_v0 }
  0x54   :  { %422 = vmatpush3.bf16.msra.mxu1 %v421_v48 }
  0x55   :  { %423 = vmatprep.subr.bf16.mxu1 %v538_v0 }
  0x56   :  { %401 = vmatpush3.bf16.msra.mxu0 %v400_v41 }
  0x58   :  { %425 = vmatpush3.bf16.msra.mxu1 %v424_v51 }
  0x59   :  { %341 = vmatmul.mubr.f32.vlgmr.msra.gmra.mrb[0].mxu0 %v436_v42 }
 0x12c   :  { %v155_v53 = vpop.f32.mrb[0].mxu0 }
 0x12d   :  { %v156_v54 = vadd.f32 %v272_v52, %v155_v53  ;;  %v342_v55 = vpop.f32.mrb[1].mxu0 }
 0x12f   :  { %437 = vtanh.f32 %v156_v54 }
 0x139   :  { %v438_v56 = vpop.eup %437 }
 0x13a   :  { %376 = vmatmul.mubr.f32.vlgmr.msra.gmra.mrb[0].mxu1 %v438_v56 }
 0x20d   :  { %v251_v58 = vpop.f32.mrb[0].mxu1 }
 0x20e   :  { %v252_v59 = vadd.f32 %v273_v57, %v251_v58  ;;  %v377_v60 = vpop.f32.mrb[1].mxu1 }
 0x210   :  { %255 = vst [vmem:[#allocation9] sm:$0xff] %v252_v59 }
 0x211   :  { %516 = shalt.err (!%p513_p0)
}
 0x212   :  { %s517_s11 = scalar_lea.hbm %s653_s5, 128 }
 0x213   :  { %p518_p1 = scmp.ne.s32.totalorder %s653_s5, %s517_s11  ;;  %p521_p2 = scmp.lt.u32.totalorder %s517_s11, %s653_s5 }
 0x215   :  { %p523_p3 = pnand %p521_p2, %p518_p1 }
 0x217   :  { %526 = shalt.err (!%p523_p3)
}
 0x218   :  { %265 = dma.vmem_to_hbm [thread:$0]  %s263_s8, 128, %s653_s5, [#allocation5]  }
 0x219   :  { %531 = dma.done.wait [#allocation5], 128  }
 0x21a   :  { %532 = vsyncadd [#allocation5], 4294967168 }
 0x21b   :  { %269 = vsyncpa [#allocation4], 1 }
 0x21c   :  { %270 = vsyncpa [#allocation7], 1 }
 0x21d   :  { %271 = vsyncpa [#allocation5], 1 }

</bundles_post_ra>
